<compile_context>
chip_gen: v6e
topology: v6e:2x2x1
jax: 0.10.0
libtpu: 0.0.40
codegen_flags: <defaults>
</compile_context>

<pallas_src>
import functools

import jax
import jax.numpy as jnp
import numpy as np
from jax import lax
from jax.experimental import pallas as pl
from jax.experimental.pallas import tpu as pltpu


def _actionness_kernel(fused_ref, loss_ref, count_ref, *, n, n_valid, weight,
                       margin):
    """One loss instance per grid step.

    fused_ref: (1, 2, n) f32 VMEM block; row 0 = pred, row 1 = label.
    loss_ref : (1, 1) f32 SMEM block (per-instance total loss).
    count_ref: (1, 1) i32 SMEM block (per-instance num_pos + num_neg).
    """
    blk = fused_ref[0]                                     # (2, n)
    pred_r = blk[0:1, :]                                   # (1, n) lane-dense
    lbl_r = blk[1:2, :]                                    # (1, n)

    pinf = jnp.float32(jnp.inf)
    ninf = jnp.float32(-jnp.inf)

    # Small iotas reused for the padding mask and the tie-break triangle.
    lane_r = lax.broadcasted_iota(jnp.int32, (1, n), 1)    # (1, n): index i
    lane_c = lax.broadcasted_iota(jnp.int32, (n, 1), 0)    # (n, 1): index j
    valid_r = lane_r < n_valid

    pos_r = valid_r & (lbl_r > 0.0)
    neg_r = valid_r & (lbl_r == 0.0)
    num_pos = jnp.sum(pos_r.astype(jnp.int32))
    num_neg = jnp.sum(neg_r.astype(jnp.int32))
    top_m = jnp.minimum(num_pos, num_neg) - 1
    has_rank = top_m > 0

    # Elementwise BCE-with-logits (numerically stable form, matches torch).
    # log(1 + exp(-|x|)) is kept (instead of log1p) for guaranteed Mosaic
    # lowering; the difference is < 1e-38 absolute and only for |x| > ~88.
    x = pred_r
    y = lbl_r
    bce = jnp.maximum(x, 0.0) - x * y + jnp.log(1.0 + jnp.exp(-jnp.abs(x)))

    # Negative predictions; non-negative / padded lanes get +inf so they never
    # sort before a real negative.  The column view is a single transpose of
    # the SAME masked vector, so values stay bit-identical and the index
    # tie-break below is exact.
    neg_val_r = jnp.where(neg_r, pred_r, pinf)             # (1, n)
    neg_val_c = jnp.transpose(neg_val_r, (1, 0))           # (n, 1)

    # cmp[j, i] == True  iff negative j sorts strictly before negative i under
    # a stable ascending sort.  The triangle mask (j < i) comes from
    # broadcasting the two small iotas — no full (n, n) int32 matrices.
    tri = lane_c < lane_r                                  # (n, n) bool, j < i
    less = neg_val_c < neg_val_r                           # v[j] <  v[i]
    eq = neg_val_c == neg_val_r                            # v[j] == v[i]
    cmp = less | (eq & tri)                                # (n, n) bool

    # Rank of each negative among negatives: sublane VPU add tree + one
    # intra-vreg reduce.  Deliberately NOT an MXU matvec.
    # TODO(synk): for n >~ 2K, row-tile this compare over a second
    # ("arbitrary") grid axis with a resident (1, n) rank accumulator.
    rank_r = jnp.sum(cmp.astype(jnp.float32), axis=0, keepdims=True)  # (1, n)
    sel_neg_r = neg_r & (rank_r < top_m.astype(jnp.float32))

    # BCE selection, with the has_rank choice hoisted to scalar level:
    #   topM > 0 : positives + topM smallest negatives
    #   topM <= 0: ALL (valid) elements — the PyTorch fallback branch.
    bce_sel = jnp.sum(jnp.where(pos_r | sel_neg_r, bce, 0.0))
    bce_all = jnp.sum(jnp.where(valid_r, bce, 0.0))
    loss_bce = jnp.where(has_rank, bce_sel, bce_all)

    # Ranking hinge loss: max over ALL negatives (noisy) and max positive.
    neg_max = jnp.max(jnp.where(neg_r, pred_r, ninf))
    pos_max = jnp.max(jnp.where(pos_r, pred_r, ninf))
    loss_rank = jnp.maximum(jnp.float32(0.0),
                            jnp.float32(margin) - neg_max + pos_max)
    loss_rank = jnp.where(has_rank, loss_rank, jnp.float32(0.0))

    loss_ref[0, 0] = loss_bce + jnp.float32(weight) * loss_rank
    count_ref[0, 0] = num_pos + jnp.where(has_rank, top_m, num_neg)


def actionness_loss_batched(logits, targets, *, weight=0.1, margin=1.0):
    """Batched ActionnessLoss.forward (size_average=False).

    logits, targets: (B, N) float arrays.  Returns (loss (B,), count (B,)).
    """
    pred = jnp.asarray(logits, dtype=jnp.float32)
    lbl = jnp.asarray(targets, dtype=jnp.float32)
    assert pred.ndim == 2 and pred.shape == lbl.shape
    b, n = pred.shape
    n_pad = max(128, ((n + 127) // 128) * 128)
    if n_pad != n:
        pad = ((0, 0), (0, n_pad - n))
        pred = jnp.pad(pred, pad)
        lbl = jnp.pad(lbl, pad)
    fused = jnp.stack([pred, lbl], axis=1)                 # (B, 2, n_pad)

    kernel = functools.partial(_actionness_kernel, n=n_pad, n_valid=n,
                               weight=float(weight), margin=float(margin))

    # Raise the scoped-VMEM limit only when the O(N^2) rank intermediates
    # would not fit the 16 MiB v5e default; cap below v7x's 64 MiB physical.
    approx_n2_bytes = 8 * n_pad * n_pad + (1 << 20)
    cp_kwargs = dict(dimension_semantics=("parallel",))
    if approx_n2_bytes > (16 << 20):
        cp_kwargs["vmem_limit_bytes"] = min(approx_n2_bytes, 60 << 20)

    loss, count = pl.pallas_call(
        kernel,
        grid=(b,),
        out_shape=(
            jax.ShapeDtypeStruct((b, 1), jnp.float32),
            jax.ShapeDtypeStruct((b, 1), jnp.int32),
        ),
        in_specs=[pl.BlockSpec((1, 2, n_pad), lambda i: (i, 0, 0))],
        out_specs=(
            pl.BlockSpec((1, 1), lambda i: (i, 0),
                         memory_space=pltpu.MemorySpace.SMEM),
            pl.BlockSpec((1, 1), lambda i: (i, 0),
                         memory_space=pltpu.MemorySpace.SMEM),
        ),
        compiler_params=pltpu.CompilerParams(**cp_kwargs),
    )(fused)
    return loss[:, 0], count[:, 0]


def actionness_loss(logit, target, *, weight=0.1, margin=1.0):
    """Single-instance equivalent of ActionnessLoss.forward (logit (N, 1))."""
    pred = logit.reshape(1, -1)
    lbl = target.reshape(1, -1)
    loss, count = actionness_loss_batched(pred, lbl, weight=weight,
                                          margin=margin)
    return loss[0], count[0]


def _reference(logit, target, weight=0.1, margin=1.0):
    """Pure-numpy replica of the PyTorch forward (size_average=False)."""
    pred = np.asarray(logit, dtype=np.float64).reshape(-1)
    label = np.asarray(target, dtype=np.float64).reshape(-1)
    pos = pred[label > 0]
    neg = pred[label == 0]
    num_pos, num_neg = pos.size, neg.size
    top_m = min(num_pos, num_neg) - 1
    if top_m > 0:
        neg_clean = np.sort(neg, kind="stable")[:top_m]
        p = np.concatenate([pos, neg_clean])
        y = np.concatenate([label[label > 0], np.zeros_like(neg_clean)])
        num_neg = top_m
    else:
        p, y = pred, label
    bce = np.maximum(p, 0.0) - p * y + np.log1p(np.exp(-np.abs(p)))
    loss_bce = bce.sum()
    loss_rank = 0.0
    if top_m > 0:
        loss_rank = max(0.0, margin - neg.max() + pos.max())
    return loss_bce + weight * loss_rank, num_pos + num_neg


def _check_single(logit, target):
    loss, count = actionness_loss(logit, target, weight=0.1, margin=1.0)
    loss = jax.block_until_ready(loss)
    count = jax.block_until_ready(count)
    ref_loss, ref_count = _reference(np.asarray(logit), np.asarray(target))
    assert int(count) == int(ref_count), (int(count), int(ref_count))
    assert np.allclose(float(loss), ref_loss, rtol=1e-4, atol=1e-4), (
        float(loss), ref_loss)


if __name__ == "__main__":
    key = jax.random.PRNGKey(0)
    k1, k2, k3, k4, k5 = jax.random.split(key, 5)

    # Case 1: single instance, N = 128, mixed labels -> topM > 0 (ranking).
    N = 128
    logit = jax.random.normal(k1, (N, 1), dtype=jnp.float32)
    target = jax.random.bernoulli(k2, p=0.4, shape=(N, 1)).astype(jnp.float32)
    _check_single(logit, target)

    # Case 2: N = 7 (padding path), topM == 0 -> fallback branch
    # (BCE over all elements, no ranking loss).
    logit2 = jax.random.normal(k3, (7, 1), dtype=jnp.float32)
    target2 = jnp.array([[1.0], [0.0], [1.0], [1.0], [1.0], [1.0], [1.0]],
                        dtype=jnp.float32)
    _check_single(logit2, target2)

    # Case 3: batched path, B = 4, N = 96 (padding).  Row 0 is forced into the
    # fallback branch (single negative); rows 1-3 hit the ranking branch.
    B, N3 = 4, 96
    logits3 = jax.random.normal(k4, (B, N3), dtype=jnp.float32)
    targets3 = jax.random.bernoulli(k5, p=0.3, shape=(B, N3)).astype(jnp.float32)
    row0 = jnp.ones((N3,), jnp.float32).at[5].set(0.0)
    targets3 = targets3.at[0].set(row0)
    losses, counts = actionness_loss_batched(logits3, targets3,
                                             weight=0.1, margin=1.0)
    losses = jax.block_until_ready(losses)
    counts = jax.block_until_ready(counts)
    for i in range(B):
        rl, rc = _reference(np.asarray(logits3[i]), np.asarray(targets3[i]))
        assert int(counts[i]) == int(rc), (i, int(counts[i]), int(rc))
        assert np.allclose(float(losses[i]), rl, rtol=1e-4, atol=1e-4), (
            i, float(losses[i]), rl)

    print("KERNEL_OK")
</pallas_src>

<mosaic_0001>
module attributes {stable_mosaic.version = 11 : i64} {
  func.func @_actionness_kernel(%arg0: i32, %arg1: memref<1x2x128xf32, #tpu.memory_space<vmem>>, %arg2: memref<1x1xf32, #tpu.memory_space<smem>>, %arg3: memref<1x1xi32, #tpu.memory_space<smem>>) attributes {dimension_semantics = [#tpu.dimension_semantics<parallel>], iteration_bounds = array<i64: 1>, scalar_prefetch = 0 : i64, scratch_operands = 0 : i64, tpu.core_type = #tpu.core_type<tc>, window_params = [{transform_indices = @transform_0, window_bounds = array<i64: 1, 2, 128>}, {transform_indices = @transform_1, window_bounds = array<i64: 1, 1>}, {transform_indices = @transform_2, window_bounds = array<i64: 1, 1>}]} {
    %c0 = arith.constant 0 : index
    %c0_0 = arith.constant 0 : index
    %c0_1 = arith.constant 0 : index
    %0 = vector.load %arg1[%c0, %c0_0, %c0_1] : memref<1x2x128xf32, #tpu.memory_space<vmem>>, vector<1x2x128xf32>
    %1 = vector.shape_cast %0 : vector<1x2x128xf32> to vector<2x128xf32>
    %2 = vector.extract_strided_slice %1 {offsets = [0, 0], sizes = [1, 128], strides = [1, 1]} : vector<2x128xf32> to vector<1x128xf32>
    %3 = vector.extract_strided_slice %1 {offsets = [1, 0], sizes = [1, 128], strides = [1, 1]} : vector<2x128xf32> to vector<1x128xf32>
    %4 = tpu.iota {dimensions = array<i32: 1>} : vector<1x128xi32>
    %5 = tpu.iota {dimensions = array<i32: 0>} : vector<128x1xi32>
    %c128_i32 = arith.constant 128 : i32
    %6 = vector.broadcast %c128_i32 : i32 to vector<1x128xi32>
    %7 = arith.cmpi slt, %4, %6 : vector<1x128xi32>
    %cst = arith.constant 0.000000e+00 : f32
    %8 = vector.broadcast %cst : f32 to vector<1x128xf32>
    %9 = arith.cmpf ogt, %3, %8 : vector<1x128xf32>
    %10 = arith.andi %7, %9 : vector<1x128xi1>
    %cst_2 = arith.constant 0.000000e+00 : f32
    %11 = vector.broadcast %cst_2 : f32 to vector<1x128xf32>
    %12 = arith.cmpf oeq, %3, %11 : vector<1x128xf32>
    %13 = arith.andi %7, %12 : vector<1x128xi1>
    %14 = arith.extui %10 : vector<1x128xi1> to vector<1x128xi32>
    %15 = vector.shape_cast %14 : vector<1x128xi32> to vector<1x1x128xi32>
    %cst_3 = arith.constant dense<0> : vector<1xi32>
    %16 = vector.multi_reduction <add>, %15, %cst_3 [1, 2] : vector<1x1x128xi32> to vector<1xi32>
    %17 = vector.shape_cast %16 : vector<1xi32> to vector<1x1x1xi32>
    %18 = vector.extract %17[0, 0, 0] : i32 from vector<1x1x1xi32>
    %19 = arith.extui %13 : vector<1x128xi1> to vector<1x128xi32>
    %20 = vector.shape_cast %19 : vector<1x128xi32> to vector<1x1x128xi32>
    %cst_4 = arith.constant dense<0> : vector<1xi32>
    %21 = vector.multi_reduction <add>, %20, %cst_4 [1, 2] : vector<1x1x128xi32> to vector<1xi32>
    %22 = vector.shape_cast %21 : vector<1xi32> to vector<1x1x1xi32>
    %23 = vector.extract %22[0, 0, 0] : i32 from vector<1x1x1xi32>
    %24 = arith.minsi %18, %23 : i32
    %c1_i32 = arith.constant 1 : i32
    %25 = arith.subi %24, %c1_i32 : i32
    %c0_i32 = arith.constant 0 : i32
    %26 = arith.cmpi sgt, %25, %c0_i32 : i32
    %cst_5 = arith.constant 0.000000e+00 : f32
    %27 = vector.broadcast %cst_5 : f32 to vector<1x128xf32>
    %28 = arith.maximumf %2, %27 : vector<1x128xf32>
    %29 = arith.mulf %2, %3 : vector<1x128xf32>
    %30 = arith.subf %28, %29 : vector<1x128xf32>
    %31 = math.absf %2 : vector<1x128xf32>
    %cst_6 = arith.constant 0.000000e+00 : f32
    %32 = vector.broadcast %cst_6 : f32 to vector<1x128xf32>
    %33 = arith.subf %32, %31 : vector<1x128xf32>
    %34 = math.exp %33 : vector<1x128xf32>
    %cst_7 = arith.constant 1.000000e+00 : f32
    %35 = vector.broadcast %cst_7 : f32 to vector<1x128xf32>
    %36 = arith.addf %35, %34 : vector<1x128xf32>
    %37 = math.log %36 : vector<1x128xf32>
    %38 = arith.addf %30, %37 : vector<1x128xf32>
    %cst_8 = arith.constant 0x7F800000 : f32
    %39 = vector.broadcast %cst_8 : f32 to vector<1x128xf32>
    %40 = arith.select %13, %2, %39 : vector<1x128xi1>, vector<1x128xf32>
    %41 = tpu.transpose %40, [1, 0] : vector<1x128xf32> -> vector<128x1xf32>
    %42 = vector.broadcast %5 : vector<128x1xi32> to vector<128x128xi32>
    %43 = vector.broadcast %4 : vector<1x128xi32> to vector<128x128xi32>
    %44 = arith.cmpi slt, %42, %43 : vector<128x128xi32>
    %45 = vector.broadcast %41 : vector<128x1xf32> to vector<128x128xf32>
    %46 = vector.broadcast %40 : vector<1x128xf32> to vector<128x128xf32>
    %47 = arith.cmpf olt, %45, %46 : vector<128x128xf32>
    %48 = vector.broadcast %41 : vector<128x1xf32> to vector<128x128xf32>
    %49 = vector.broadcast %40 : vector<1x128xf32> to vector<128x128xf32>
    %50 = arith.cmpf oeq, %48, %49 : vector<128x128xf32>
    %51 = arith.andi %50, %44 : vector<128x128xi1>
    %52 = arith.ori %47, %51 : vector<128x128xi1>
    %53 = arith.extui %52 : vector<128x128xi1> to vector<128x128xi32>
    %54 = arith.sitofp %53 : vector<128x128xi32> to vector<128x128xf32>
    %cst_9 = arith.constant dense<0.000000e+00> : vector<128xf32>
    %55 = vector.multi_reduction <add>, %54, %cst_9 [0] : vector<128x128xf32> to vector<128xf32>
    %56 = vector.shape_cast %55 : vector<128xf32> to vector<1x128xf32>
    %57 = arith.sitofp %25 : i32 to f32
    %58 = vector.broadcast %57 : f32 to vector<1x128xf32>
    %59 = arith.cmpf olt, %56, %58 : vector<1x128xf32>
    %60 = arith.andi %13, %59 : vector<1x128xi1>
    %61 = arith.ori %10, %60 : vector<1x128xi1>
    %cst_10 = arith.constant 0.000000e+00 : f32
    %62 = vector.broadcast %cst_10 : f32 to vector<1x128xf32>
    %63 = arith.select %61, %38, %62 : vector<1x128xi1>, vector<1x128xf32>
    %64 = vector.shape_cast %63 : vector<1x128xf32> to vector<1x1x128xf32>
    %cst_11 = arith.constant dense<0.000000e+00> : vector<1xf32>
    %65 = vector.multi_reduction <add>, %64, %cst_11 [1, 2] : vector<1x1x128xf32> to vector<1xf32>
    %66 = vector.shape_cast %65 : vector<1xf32> to vector<1x1x1xf32>
    %67 = vector.extract %66[0, 0, 0] : f32 from vector<1x1x1xf32>
    %cst_12 = arith.constant 0.000000e+00 : f32
    %68 = vector.broadcast %cst_12 : f32 to vector<1x128xf32>
    %69 = arith.select %7, %38, %68 : vector<1x128xi1>, vector<1x128xf32>
    %70 = vector.shape_cast %69 : vector<1x128xf32> to vector<1x1x128xf32>
    %cst_13 = arith.constant dense<0.000000e+00> : vector<1xf32>
    %71 = vector.multi_reduction <add>, %70, %cst_13 [1, 2] : vector<1x1x128xf32> to vector<1xf32>
    %72 = vector.shape_cast %71 : vector<1xf32> to vector<1x1x1xf32>
    %73 = vector.extract %72[0, 0, 0] : f32 from vector<1x1x1xf32>
    %74 = arith.select %26, %67, %73 : f32
    %cst_14 = arith.constant 0xFF800000 : f32
    %75 = vector.broadcast %cst_14 : f32 to vector<1x128xf32>
    %76 = arith.select %13, %2, %75 : vector<1x128xi1>, vector<1x128xf32>
    %77 = vector.shape_cast %76 : vector<1x128xf32> to vector<1x1x128xf32>
    %cst_15 = arith.constant dense<0xFF800000> : vector<1xf32>
    %78 = vector.multi_reduction <maximumf>, %77, %cst_15 [1, 2] : vector<1x1x128xf32> to vector<1xf32>
    %79 = vector.shape_cast %78 : vector<1xf32> to vector<1x1x1xf32>
    %80 = vector.extract %79[0, 0, 0] : f32 from vector<1x1x1xf32>
    %cst_16 = arith.constant 0xFF800000 : f32
    %81 = vector.broadcast %cst_16 : f32 to vector<1x128xf32>
    %82 = arith.select %10, %2, %81 : vector<1x128xi1>, vector<1x128xf32>
    %83 = vector.shape_cast %82 : vector<1x128xf32> to vector<1x1x128xf32>
    %cst_17 = arith.constant dense<0xFF800000> : vector<1xf32>
    %84 = vector.multi_reduction <maximumf>, %83, %cst_17 [1, 2] : vector<1x1x128xf32> to vector<1xf32>
    %85 = vector.shape_cast %84 : vector<1xf32> to vector<1x1x1xf32>
    %86 = vector.extract %85[0, 0, 0] : f32 from vector<1x1x1xf32>
    %cst_18 = arith.constant 1.000000e+00 : f32
    %87 = arith.subf %cst_18, %80 : f32
    %88 = arith.addf %87, %86 : f32
    %cst_19 = arith.constant 0.000000e+00 : f32
    %89 = arith.maximumf %cst_19, %88 : f32
    %cst_20 = arith.constant 0.000000e+00 : f32
    %90 = arith.select %26, %89, %cst_20 : f32
    %cst_21 = arith.constant 1.000000e-01 : f32
    %91 = arith.mulf %cst_21, %90 : f32
    %92 = arith.addf %74, %91 : f32
    %c0_22 = arith.constant 0 : index
    %c0_23 = arith.constant 0 : index
    %93 = memref.load %arg2[%c0_22, %c0_23] : memref<1x1xf32, #tpu.memory_space<smem>>
    memref.store %92, %arg2[%c0_22, %c0_23] : memref<1x1xf32, #tpu.memory_space<smem>>
    %94 = arith.select %26, %25, %23 : i32
    %95 = arith.addi %18, %94 : i32
    %c0_24 = arith.constant 0 : index
    %c0_25 = arith.constant 0 : index
    %96 = memref.load %arg3[%c0_24, %c0_25] : memref<1x1xi32, #tpu.memory_space<smem>>
    memref.store %95, %arg3[%c0_24, %c0_25] : memref<1x1xi32, #tpu.memory_space<smem>>
    return
  }
  func.func @transform_0(%arg0: i32) -> (i32, i32, i32) {
    %c0_i32 = arith.constant 0 : i32
    %c0_i32_0 = arith.constant 0 : i32
    %c0_i32_1 = arith.constant 0 : i32
    return %arg0, %c0_i32, %c0_i32_0 : i32, i32, i32
  }
  func.func @transform_1(%arg0: i32) -> (i32, i32) {
    %c0_i32 = arith.constant 0 : i32
    %c0_i32_0 = arith.constant 0 : i32
    return %arg0, %c0_i32 : i32, i32
  }
  func.func @transform_2(%arg0: i32) -> (i32, i32) {
    %c0_i32 = arith.constant 0 : i32
    %c0_i32_0 = arith.constant 0 : i32
    return %arg0, %c0_i32 : i32, i32
  }
}

</mosaic_0001>

<bundles_post_ra>
// kernel: tpu_custom_call.1
= control target key start
LH: loop header
LB: loop body
LE: loop exit
PB: predicated region body
PF: predicated region fallthrough
CT: control target
= control target key end

     0   :  { %8 = vsyncpa [#allocation3], 0  ;;  %s723_s0 = inlined_call_operand.hbm [shape: f32[1,2,128], index: 0, kind: input, shape index: {}]   ;;  %s724_s1 = inlined_call_operand.hbm [shape: f32[1,1], index: 1, kind: output, shape index: {0}]   ;;  %s725_s2 = inlined_call_operand.hbm [shape: s32[1,1], index: 2, kind: output, shape index: {1}]  }
   0x1   :  { %9 = vsyncpa [#allocation4], 0 }
   0x2   :  { %10 = vsyncpa [#allocation7], 0  ;;  %s543_s9 = smov [#allocation2]  }
   0x3   :  { %s17_s10 = sshll.u32 %s543_s9, 4  ;;  %s18_s10 = int_to_ptr.vmem [resolvable:$true] %s17_s10 }
   0x4   :  { %s509_s11 = scalar_lea.vmem %s18_s10, 32  ;;  %p514_p1 = scmp.lt.s32.totalorder %s18_s10, %s18_s10 }
   0x5   :  { %p510_p0 = scmp.ne.s32.totalorder %s18_s10, %s509_s11  ;;  %p515_p2 = scmp.lt.s32.totalorder %s509_s11, %s509_s11 }
   0x7   :  { %p516_p3 = por %p515_p2, %p514_p1 }
   0x9   :  { %p517_p4 = pnand %p516_p3, %p510_p0 }
   0xb   :  { %520 = shalt.err (!%p517_p4)
}
   0xc   :  { %20 = dma.hbm_to_vmem [thread:$0]  %s723_s0, 32, %s18_s10, [#allocation3]  }
   0xd   :  { %537 = dma.done.wait [#allocation3], 32  }
   0xe   :  { %538 = vsyncadd [#allocation3], 4294967264  ;;  %v544_v0 = vmov 0   ;;  %v567_v1 = vld [vmem:[#allocation2] sm:$0x3]  ;;  %vm726_vm0 = vcmask 1041409  }
   0xf   :  { %495 = vset.pattern.permute.xlu1 %v544_v0  ;;  %vm728_vm1 = vcmp.gt.f32.partialorder %v567_v1, 0.0  ;;  %vm729_vm2 = vcmp.eq.f32.partialorder %v567_v1, 0.0  ;;  %v578_v14 = vrot.slane %v567_v1, 7  ;;  %v102_v51 = vand.u32 2147483647, %v567_v1  ;;  %s546_s20 = smov [#allocation6]  }
  0x10   :  { %v49_v2 = vsel %vm728_vm1, 1, %v544_v0  ;;  %v71_v3 = vsel %vm729_vm2, 1, %v544_v0  ;;  %v98_v62 = vrot.slane %v567_v1, 1  ;;  %v96_v63 = vmax.f32 %v567_v1, 0.0  ;;  %s547_s28 = smov 0.0   ;;  %s548_s4 = smov [#allocation5]  }
  0x11   :  { %v51_v4 = vsel %vm726_vm0, %v49_v2, 0  ;;  %v72_v5 = vsel %vm726_vm0, %v71_v3, 0  ;;  %v583_v15 = vsel %vm729_vm2, %v578_v14, inf  ;;  %v103_v53 = vsub.f32 0.0, %v102_v51 }
  0x12   :  { %v53_v6 = vshrl.u32 %v51_v4, 16  ;;  %v52_v7 = vand.u32 65535, %v51_v4  ;;  %v74_v8 = vshrl.u32 %v72_v5, 16  ;;  %v73_v9 = vand.u32 65535, %v72_v5 }
  0x13   :  { %v114_v16 = vrot.slane %v583_v15, 1  ;;  %v104_v55 = vmul.f32 1.442695, %v103_v53  ;;  %vm727_vm3 = vcmask 1040384  }
  0x14   :  { %v55_v10 = vcvt.s32.f32 %v53_v6  ;;  %v54_v11 = vcvt.s32.f32 %v52_v7  ;;  %v76_v12 = vcvt.s32.f32 %v74_v8  ;;  %v75_v13 = vcvt.s32.f32 %v73_v9 }
  0x15   :  { %497 = vpow2.f32 %v104_v55  ;;  %v400_v7 = vsel %vm729_vm2, %v578_v14, -inf }
  0x16   :  { %58 = vadd.xlane.f32.xlu0 %v55_v10  ;;  %56 = vadd.xlane.f32.xlu1 %v54_v11  ;;  %v401_v8 = vsel %vm726_vm0, %v400_v7, -inf  ;;  %v25_v11 = vlaneseq }
  0x1a   :  { %79 = vadd.xlane.f32.xlu0 %v76_v12  ;;  %77 = vadd.xlane.f32.xlu1 %v75_v13  ;;  %v604_v13 = vshrl.u32 %v25_v11, 7 }
  0x1c   :  { %v41_v55 = vadd.s32 104, %v604_v13 }
  0x22   :  { %v498_v60 = vpop.eup %497 }
  0x23   :  { %v106_v61 = vadd.f32 1.0, %v498_v60 }
  0x25   :  { %499 = vlog2.f32 %v106_v61  ;;  %v42_v61 = vadd.s32 112, %v604_v13 }
  0x32   :  { %v500_v2 = vpop.eup %499 }
  0x33   :  { %v108_v4 = vmul.f32 0.6931472, %v500_v2 }
  0x47   :  { %116 = vxpose.xlu0.b32.start.end [1/1] (short) %v114_v16, 128 }
  0x70   :  { %496 = vset.pattern.permute.xlu0 %v544_v0  ;;  %v100_v0 = vmul.f32 %v98_v62, %v567_v1 }
  0x72   :  { %v101_v3 = vsub.f32 %v96_v63, %v100_v0 }
  0x74   :  { %v596_v5 = vadd.f32 %v108_v4, %v101_v3  ;;  %v43_v4 = vadd.s32 120, %v604_v13 }
  0x76   :  { %v389_v6 = vsel %vm727_vm3, %v596_v5, 0.0 }
  0x9f   :  { %v59_v17 = vpop.xlane.xlu0 %58  ;;  %v57_v18 = vpop.xlane.xlu1 %56 }
  0xa0   :  { %v61_v19 = vcvt.f32.s32 %v59_v17  ;;  %v60_v20 = vcvt.f32.s32 %v57_v18  ;;  %v246_v17 = vsub.s32 1, %v604_v13 }
  0xa2   :  { %v62_v21 = vshll.u32 %v61_v19, 16  ;;  %v608_v19 = vrot.slane %v583_v15, %v246_v17 }
  0xa3   :  { %v80_v22 = vpop.xlane.xlu0 %79  ;;  %v78_v23 = vpop.xlane.xlu1 %77 }
  0xa4   :  { %v63_v24 = vadd.s32 %v62_v21, %v60_v20  ;;  %v82_v25 = vcvt.f32.s32 %v80_v22  ;;  %v81_v26 = vcvt.f32.s32 %v78_v23  ;;  %v610_v20 = vand.u32 127, %v25_v11 }
  0xa5   :  { %v29_v22 = vadd.s32 8, %v604_v13  ;;  %v30_v23 = vadd.s32 16, %v604_v13 }
  0xa6   :  { %v64_v27 = vrot.slane %v63_v24, 4  ;;  %v83_v28 = vshll.u32 %v82_v25, 16  ;;  %vm148_vm4 = vcmp.lt.s32.totalorder %v604_v13, %v610_v20  ;;  %v32_v25 = vadd.s32 32, %v604_v13 }
  0xa7   :  { %vm149_vm6 = vcmp.lt.s32.totalorder %v29_v22, %v610_v20  ;;  %vm150_vm10 = vcmp.lt.s32.totalorder %v30_v23, %v610_v20 }
  0xa8   :  { %v84_v29 = vadd.s32 %v83_v28, %v81_v26  ;;  %v65_v30 = vadd.s32 %v64_v27, %v63_v24  ;;  %v31_v24 = vadd.s32 24, %v604_v13  ;;  %v730_v26 = vmov 0 }
  0xa9   :  { %v33_v27 = vadd.s32 40, %v604_v13  ;;  %vm152_vm1 = vcmp.lt.s32.totalorder %v32_v25, %v610_v20  ;;  %v34_v28 = vadd.s32 48, %v604_v13  ;;  %v371_v25 = vrot.slane %v596_v5, 7 }
  0xaa   :  { %v85_v31 = vrot.slane %v84_v29, 4  ;;  %v66_v32 = vrot.slane %v65_v30, 2  ;;  %vm151_vm15 = vcmp.lt.s32.totalorder %v31_v24, %v610_v20 }
  0xac   :  { %v86_v33 = vadd.s32 %v85_v31, %v84_v29  ;;  %v67_v34 = vadd.s32 %v66_v32, %v65_v30  ;;  %v35_v30 = vadd.s32 56, %v604_v13  ;;  %v545_v31 = vmov 0.0  }
  0xae   :  { %v68_v35 = vrot.slane %v67_v34, 1  ;;  %v87_v36 = vrot.slane %v86_v33, 2 }
  0xb0   :  { %v69_v37 = vadd.s32 %v68_v35, %v67_v34  ;;  %v88_v38 = vadd.s32 %v87_v36, %v86_v33  ;;  %v36_v33 = vadd.s32 64, %v604_v13 }
  0xb2   :  { %477 = vpush %v69_v37  ;;  %v89_v39 = vrot.slane %v88_v38, 1 }
  0xb4   :  { %v90_v40 = vadd.s32 %v89_v39, %v88_v38  ;;  %v37_v39 = vadd.s32 72, %v604_v13 }
  0xb6   :  { %479 = vpush %v90_v40 }
  0xc3   :  { %v132_v41 = vpop.trf.xlu0 }
  0xc4   :  { %166 = vperm.xlu1 %495, %v132_v41  }
  0xc7   :  { %v133_v42 = vpop.trf.xlu0 }
  0xc8   :  { %171 = vperm.xlu1 %495, %v133_v42   ;;  %v38_v42 = vadd.s32 80, %v604_v13 }
  0xcb   :  { %v134_v43 = vpop.trf.xlu0 }
  0xcc   :  { %176 = vperm.xlu1 %495, %v134_v43  }
  0xcf   :  { %v135_v44 = vpop.trf.xlu0 }
  0xd0   :  { %181 = vperm.xlu1 %495, %v135_v44  }
  0xd3   :  { %v136_v45 = vpop.trf.xlu0 }
  0xd4   :  { %186 = vperm.xlu1 %495, %v136_v45  }
  0xd7   :  { %v137_v46 = vpop.trf.xlu0 }
  0xd8   :  { %191 = vperm.xlu1 %495, %v137_v46   ;;  %v39_v46 = vadd.s32 88, %v604_v13 }
  0xdb   :  { %v138_v47 = vpop.trf.xlu0 }
  0xdc   :  { %196 = vperm.xlu1 %495, %v138_v47  }
  0xdf   :  { %v139_v48 = vpop.trf.xlu0 }
  0xe0   :  { %201 = vperm.xlu1 %495, %v139_v48  }
  0xe3   :  { %v140_v49 = vpop.trf.xlu0  ;;  %s478_s0 = spop %477 }
  0xe4   :  { %206 = vperm.xlu0 %496, %v140_v49   ;;  %v40_v49 = vadd.s32 96, %v604_v13 }
  0xe7   :  { %v141_v50 = vpop.trf.xlu0  ;;  %s480_s14 = spop %479 }
  0xe8   :  { %p92_p5 = scmp.lt.s32.totalorder %s478_s0, %s480_s14  ;;  %211 = vperm.xlu1 %495, %v141_v50  }
  0xea   :  { %s93_s15 = scalar_select %p92_p5, %s478_s0, %s480_s14 }
  0xeb   :  { %v142_v52 = vpop.trf.xlu0 }
  0xec   :  { %s587_s16 = sadd.s32 4294967295, %s93_s15  ;;  %216 = vperm.xlu1 %495, %v142_v52  }
  0xed   :  { %p95_p6 = scmp.gt.s32.totalorder %s587_s16, 0  ;;  %s365_s19 = scvt.s32.f32 %s587_s16 }
  0xef   :  { %s430_s17 = scalar_select %p95_p6, %s587_s16, %s480_s14  ;;  %v143_v54 = vpop.trf.xlu0 }
  0xf0   :  { %221 = vperm.xlu1 %495, %v143_v54  }
  0xf1   :  { %s431_s18 = sadd.s32 %s478_s0, %s430_s17 }
  0xf2   :  { %433 = sst [smem:[#allocation6]] %s431_s18 }
  0xf3   :  { %v144_v56 = vpop.trf.xlu0  ;;  %449 = dma.smem_to_hbm %s546_s20, 16, %s725_s2, [#allocation7]  }
  0xf4   :  { %226 = vperm.xlu1 %495, %v144_v56  }
  0xf7   :  { %v145_v57 = vpop.trf.xlu0 }
  0xf8   :  { %231 = vperm.xlu1 %495, %v145_v57  }
  0xfb   :  { %v146_v58 = vpop.trf.xlu0 }
  0xfc   :  { %236 = vperm.xlu1 %495, %v146_v58  }
  0xff   :  { %v147_v59 = vpop.trf.xlu0 }
 0x100   :  { %241 = vperm.xlu1 %495, %v147_v59  }
 0x124   :  { %390 = vadd.xlane.f32.xlu1 %v389_v6 }
 0x128   :  { %402 = vmax.xlane.f32.xlu1 %v401_v8 }
 0x13f   :  { %v167_v9 = vpop.permute.xlu1 %166 }
 0x140   :  { %vm264_vm5 = vcmp.eq.f32.partialorder %v167_v9, %v608_v19  ;;  %vm248_vm8 = vcmp.lt.f32.partialorder %v167_v9, %v608_v19 }
 0x141   :  { %vm280_vm9 = vmand %vm264_vm5, %vm148_vm4 }
 0x142   :  { %vm625_vm14 = vmor %vm248_vm8, %vm280_vm9  ;;  %vm153_vm9 = vcmp.lt.s32.totalorder %v33_v27, %v610_v20 }
 0x143   :  { %v172_v10 = vpop.permute.xlu1 %171  ;;  %v731_v26 = vsel %vm625_vm14, 4294967295, %v730_v26 }
 0x144   :  { %vm265_vm7 = vcmp.eq.f32.partialorder %v172_v10, %v608_v19  ;;  %vm249_vm12 = vcmp.lt.f32.partialorder %v172_v10, %v608_v19 }
 0x145   :  { %vm281_vm13 = vmand %vm265_vm7, %vm149_vm6 }
 0x146   :  { %vm297_vm3 = vmor %vm249_vm12, %vm281_vm13  ;;  %vm154_vm13 = vcmp.lt.s32.totalorder %v34_v28, %v610_v20 }
 0x147   :  { %v177_v12 = vpop.permute.xlu1 %176  ;;  %v462_v32 = vsel %vm297_vm3, 1.0, %v545_v31 }
 0x148   :  { %vm266_vm11 = vcmp.eq.f32.partialorder %v177_v12, %v608_v19  ;;  %vm250_vm4 = vcmp.lt.f32.partialorder %v177_v12, %v608_v19 }
 0x149   :  { %vm282_vm5 = vmand %vm266_vm11, %vm150_vm10 }
 0x14a   :  { %vm298_vm8 = vmor %vm250_vm4, %vm282_vm5 }
 0x14b   :  { %v182_v16 = vpop.permute.xlu1 %181  ;;  %v463_v35 = vsel %vm298_vm8, 1.0, %v545_v31  ;;  %vm156_vm8 = vcmp.lt.s32.totalorder %v36_v33, %v610_v20 }
 0x14c   :  { %vm267_vm0 = vcmp.eq.f32.partialorder %v182_v16, %v608_v19  ;;  %vm251_vm6 = vcmp.lt.f32.partialorder %v182_v16, %v608_v19 }
 0x14d   :  { %vm283_vm7 = vmand %vm267_vm0, %vm151_vm15  ;;  %vm732_vm15 = vnez %v731_v26  ;;  %v366_v26 = vstv %s365_s19 }
 0x14e   :  { %vm299_vm12 = vmor %vm251_vm6, %vm283_vm7  ;;  %v461_v34 = vsel %vm732_vm15, 1.0, %v545_v31  ;;  %vm157_vm15 = vcmp.lt.s32.totalorder %v37_v39, %v610_v20 }
 0x14f   :  { %v187_v18 = vpop.permute.xlu1 %186  ;;  %v344_v38 = vadd.f32 %v462_v32, %v461_v34  ;;  %v464_v40 = vsel %vm299_vm12, 1.0, %v545_v31 }
 0x150   :  { %vm268_vm2 = vcmp.eq.f32.partialorder %v187_v18, %v608_v19  ;;  %vm252_vm10 = vcmp.lt.f32.partialorder %v187_v18, %v608_v19 }
 0x151   :  { %vm284_vm11 = vmand %vm268_vm2, %vm152_vm1  ;;  %vm155_vm2 = vcmp.lt.s32.totalorder %v35_v30, %v610_v20  ;;  %v345_v41 = vadd.f32 %v463_v35, %v344_v38 }
 0x152   :  { %vm300_vm1 = vmor %vm252_vm10, %vm284_vm11 }
 0x153   :  { %v192_v21 = vpop.permute.xlu1 %191  ;;  %v465_v43 = vsel %vm300_vm1, 1.0, %v545_v31  ;;  %v346_v45 = vadd.f32 %v464_v40, %v345_v41  ;;  %vm158_vm1 = vcmp.lt.s32.totalorder %v38_v42, %v610_v20 }
 0x154   :  { %vm269_vm14 = vcmp.eq.f32.partialorder %v192_v21, %v608_v19  ;;  %vm253_vm4 = vcmp.lt.f32.partialorder %v192_v21, %v608_v19 }
 0x155   :  { %vm285_vm5 = vmand %vm269_vm14, %vm153_vm9  ;;  %v347_v48 = vadd.f32 %v465_v43, %v346_v45 }
 0x156   :  { %vm301_vm14 = vmor %vm253_vm4, %vm285_vm5 }
 0x157   :  { %v197_v15 = vpop.permute.xlu1 %196  ;;  %v466_v47 = vsel %vm301_vm14, 1.0, %v545_v31  ;;  %vm159_vm14 = vcmp.lt.s32.totalorder %v39_v46, %v610_v20 }
 0x158   :  { %vm270_vm0 = vcmp.eq.f32.partialorder %v197_v15, %v608_v19  ;;  %vm254_vm6 = vcmp.lt.f32.partialorder %v197_v15, %v608_v19  ;;  %v348_v52 = vadd.f32 %v466_v47, %v347_v48 }
 0x159   :  { %vm286_vm7 = vmand %vm270_vm0, %vm154_vm13 }
 0x15a   :  { %vm302_vm12 = vmor %vm254_vm6, %vm286_vm7 }
 0x15b   :  { %v202_v29 = vpop.permute.xlu1 %201  ;;  %v467_v50 = vsel %vm302_vm12, 1.0, %v545_v31  ;;  %vm160_vm12 = vcmp.lt.s32.totalorder %v40_v49, %v610_v20 }
 0x15c   :  { %vm271_vm3 = vcmp.eq.f32.partialorder %v202_v29, %v608_v19  ;;  %vm255_vm10 = vcmp.lt.f32.partialorder %v202_v29, %v608_v19  ;;  %v349_v54 = vadd.f32 %v467_v50, %v348_v52 }
 0x15d   :  { %vm287_vm11 = vmand %vm271_vm3, %vm155_vm2 }
 0x15e   :  { %vm303_vm5 = vmor %vm255_vm10, %vm287_vm11 }
 0x15f   :  { %v207_v36 = vpop.permute.xlu0 %206  ;;  %v468_v53 = vsel %vm303_vm5, 1.0, %v545_v31 }
 0x160   :  { %vm272_vm9 = vcmp.eq.f32.partialorder %v207_v36, %v608_v19  ;;  %vm256_vm0 = vcmp.lt.f32.partialorder %v207_v36, %v608_v19  ;;  %v350_v58 = vadd.f32 %v468_v53, %v349_v54 }
 0x161   :  { %vm288_vm4 = vmand %vm272_vm9, %vm156_vm8 }
 0x162   :  { %vm304_vm7 = vmor %vm256_vm0, %vm288_vm4 }
 0x163   :  { %v212_v37 = vpop.permute.xlu1 %211  ;;  %v469_v56 = vsel %vm304_vm7, 1.0, %v545_v31 }
 0x164   :  { %vm273_vm13 = vcmp.eq.f32.partialorder %v212_v37, %v608_v19  ;;  %vm257_vm3 = vcmp.lt.f32.partialorder %v212_v37, %v608_v19  ;;  %v351_v60 = vadd.f32 %v469_v56, %v350_v58 }
 0x165   :  { %vm289_vm6 = vmand %vm273_vm13, %vm157_vm15 }
 0x166   :  { %vm305_vm11 = vmor %vm257_vm3, %vm289_vm6  ;;  %vm161_vm3 = vcmp.lt.s32.totalorder %v41_v55, %v610_v20 }
 0x167   :  { %v217_v44 = vpop.permute.xlu1 %216  ;;  %v470_v59 = vsel %vm305_vm11, 1.0, %v545_v31 }
 0x168   :  { %vm274_vm2 = vcmp.eq.f32.partialorder %v217_v44, %v608_v19  ;;  %vm258_vm9 = vcmp.lt.f32.partialorder %v217_v44, %v608_v19  ;;  %v352_v0 = vadd.f32 %v470_v59, %v351_v60 }
 0x169   :  { %vm290_vm10 = vmand %vm274_vm2, %vm158_vm1 }
 0x16a   :  { %vm306_vm0 = vmor %vm258_vm9, %vm290_vm10  ;;  %vm162_vm10 = vcmp.lt.s32.totalorder %v42_v61, %v610_v20 }
 0x16b   :  { %v222_v51 = vpop.permute.xlu1 %221  ;;  %v471_v62 = vsel %vm306_vm0, 1.0, %v545_v31  ;;  %vm163_vm0 = vcmp.lt.s32.totalorder %v43_v4, %v610_v20 }
 0x16c   :  { %vm275_vm8 = vcmp.eq.f32.partialorder %v222_v51, %v608_v19  ;;  %vm259_vm15 = vcmp.lt.f32.partialorder %v222_v51, %v608_v19  ;;  %v353_v3 = vadd.f32 %v471_v62, %v352_v0 }
 0x16d   :  { %vm291_vm13 = vmand %vm275_vm8, %vm159_vm14 }
 0x16e   :  { %vm307_vm2 = vmor %vm259_vm15, %vm291_vm13 }
 0x16f   :  { %v227_v57 = vpop.permute.xlu1 %226  ;;  %v472_v2 = vsel %vm307_vm2, 1.0, %v545_v31 }
 0x170   :  { %vm276_vm4 = vcmp.eq.f32.partialorder %v227_v57, %v608_v19  ;;  %vm260_vm5 = vcmp.lt.f32.partialorder %v227_v57, %v608_v19  ;;  %v354_v8 = vadd.f32 %v472_v2, %v353_v3 }
 0x171   :  { %vm292_vm1 = vmand %vm276_vm4, %vm160_vm12 }
 0x172   :  { %vm308_vm6 = vmor %vm260_vm5, %vm292_vm1 }
 0x173   :  { %v232_v63 = vpop.permute.xlu1 %231  ;;  %v473_v6 = vsel %vm308_vm6, 1.0, %v545_v31  ;;  %vm733_vm6 = vcmp.eq.f32.partialorder %v567_v1, 0.0 }
 0x174   :  { %vm261_vm7 = vcmp.lt.f32.partialorder %v232_v63, %v608_v19  ;;  %vm277_vm14 = vcmp.eq.f32.partialorder %v232_v63, %v608_v19  ;;  %v355_v10 = vadd.f32 %v473_v6, %v354_v8 }
 0x175   :  { %vm293_vm8 = vmand %vm277_vm14, %vm161_vm3  ;;  %vm734_vm14 = vcmp.gt.f32.partialorder %v567_v1, 0.0 }
 0x176   :  { %vm309_vm9 = vmor %vm261_vm7, %vm293_vm8 }
 0x177   :  { %v237_v7 = vpop.permute.xlu1 %236  ;;  %v474_v9 = vsel %vm309_vm9, 1.0, %v545_v31  ;;  %vm735_vm9 = vmmov %vm734_vm14 }
 0x178   :  { %vm262_vm11 = vcmp.lt.f32.partialorder %v237_v7, %v608_v19  ;;  %vm278_vm12 = vcmp.eq.f32.partialorder %v237_v7, %v608_v19  ;;  %v356_v13 = vadd.f32 %v474_v9, %v355_v10  ;;  %v411_v28 = vsel %vm735_vm9, %v578_v14, -inf }
 0x179   :  { %vm294_vm15 = vmand %vm278_vm12, %vm162_vm10  ;;  %vm736_vm10 = vcmask 1040384  }
 0x17a   :  { %vm310_vm13 = vmor %vm262_vm11, %vm294_vm15  ;;  %vm737_vm11 = vcmask 1041409  }
 0x17b   :  { %v475_v11 = vsel %vm310_vm13, 1.0, %v545_v31  ;;  %v242_v12 = vpop.permute.xlu1 %241  ;;  %v412_v30 = vsel %vm737_vm11, %v411_v28, -inf }
 0x17c   :  { %vm263_vm4 = vcmp.lt.f32.partialorder %v242_v12, %v608_v19  ;;  %vm279_vm5 = vcmp.eq.f32.partialorder %v242_v12, %v608_v19  ;;  %v357_v16 = vadd.f32 %v475_v11, %v356_v13 }
 0x17d   :  { %vm295_vm1 = vmand %vm279_vm5, %vm163_vm0 }
 0x17e   :  { %vm311_vm2 = vmor %vm263_vm4, %vm295_vm1 }
 0x17f   :  { %v476_v17 = vsel %vm311_vm2, 1.0, %v545_v31 }
 0x180   :  { %v358_v18 = vadd.f32 %v476_v17, %v357_v16 }
 0x182   :  { %v359_v21 = vrot.slane %v358_v18, 4 }
 0x184   :  { %v360_v22 = vadd.f32 %v359_v21, %v358_v18 }
 0x186   :  { %v361_v23 = vrot.slane %v360_v22, 2 }
 0x188   :  { %v362_v24 = vadd.f32 %v361_v23, %v360_v22 }
 0x18a   :  { %v363_v20 = vrot.slane %v362_v24, 1 }
 0x18c   :  { %v364_v15 = vadd.f32 %v363_v20, %v362_v24 }
 0x18e   :  { %vm367_vm3 = vcmp.lt.f32.partialorder %v364_v15, %v366_v26 }
 0x18f   :  { %vm368_vm7 = vmand %vm733_vm6, %vm367_vm3 }
 0x190   :  { %vm369_vm8 = vmor %vm734_vm14, %vm368_vm7 }
 0x191   :  { %v373_v19 = vsel %vm369_vm8, %v371_v25, 0.0 }
 0x192   :  { %v375_v27 = vrot.slane %v373_v19, 1 }
 0x194   :  { %v378_v29 = vsel %vm736_vm10, %v375_v27, 0.0 }
 0x195   :  { %379 = vadd.xlane.f32.xlu1 %v378_v29 }
 0x199   :  { %413 = vmax.xlane.f32.xlu1 %v412_v30 }
 0x1ad   :  { %v391_v5 = vpop.xlane.xlu1 %390 }
 0x1ae   :  { %v392_v32 = vrot.slane %v391_v5, 4 }
 0x1b0   :  { %v393_v34 = vadd.f32 %v392_v32, %v391_v5 }
 0x1b1   :  { %v403_v31 = vpop.xlane.xlu1 %402 }
 0x1b2   :  { %v404_v33 = vrot.slane %v403_v31, 4  ;;  %v394_v36 = vrot.slane %v393_v34, 2 }
 0x1b4   :  { %v405_v35 = vmax.f32 %v403_v31, %v404_v33  ;;  %v395_v40 = vadd.f32 %v394_v36, %v393_v34 }
 0x1b6   :  { %v406_v14 = vrot.slane %v405_v35, 2  ;;  %v396_v46 = vrot.slane %v395_v40, 1 }
 0x1b8   :  { %v407_v43 = vmax.f32 %v405_v35, %v406_v14  ;;  %v397_v52 = vadd.f32 %v396_v46, %v395_v40 }
 0x1ba   :  { %v408_v49 = vrot.slane %v407_v43, 1 }
 0x1bc   :  { %v409_v53 = vmax.f32 %v407_v43, %v408_v49 }
 0x21e   :  { %v380_v1 = vpop.xlane.xlu1 %379 }
 0x21f   :  { %v381_v37 = vrot.slane %v380_v1, 4 }
 0x221   :  { %v382_v38 = vadd.f32 %v381_v37, %v380_v1 }
 0x222   :  { %v414_v39 = vpop.xlane.xlu1 %413 }
 0x223   :  { %v383_v41 = vrot.slane %v382_v38, 2  ;;  %v415_v42 = vrot.slane %v414_v39, 4 }
 0x225   :  { %v416_v44 = vmax.f32 %v414_v39, %v415_v42  ;;  %v384_v45 = vadd.f32 %v383_v41, %v382_v38 }
 0x227   :  { %v417_v47 = vrot.slane %v416_v44, 2  ;;  %v385_v48 = vrot.slane %v384_v45, 1 }
 0x229   :  { %v418_v50 = vmax.f32 %v416_v44, %v417_v47  ;;  %v386_v51 = vadd.f32 %v385_v48, %v384_v45 }
 0x22b   :  { %481 = vpush %v386_v51  ;;  %v419_v54 = vrot.slane %v418_v50, 1 }
 0x22c   :  { %483 = vpush %v397_v52 }
 0x22d   :  { %485 = vpush %v409_v53  ;;  %v420_v55 = vmax.f32 %v418_v50, %v419_v54 }
 0x22f   :  { %487 = vpush %v420_v55 }
 0x25c   :  { %s482_s2 = spop %481 }
 0x25d   :  { %s484_s23 = spop %483 }
 0x25e   :  { %s486_s24 = spop %485  ;;  %s741_s2 = smov (!%p95_p6, %s482_s2), %s484_s23 }
 0x25f   :  { %s422_s25 = ssub.f32 1.0, %s486_s24 }
 0x260   :  { %s488_s26 = spop %487 }
 0x261   :  { %s423_s27 = sadd.f32 %s488_s26, %s422_s25 }
 0x263   :  { %s424_s29 = smax.f32 %s547_s28, %s423_s27 }
 0x264   :  { %s739_s29 = smov (!%p95_p6, %s424_s29), 0.0 }
 0x265   :  { %s426_s30 = smul.f32 0.1, %s739_s29 }
 0x267   :  { %s427_s3 = sadd.f32 %s426_s30, %s741_s2 }
 0x269   :  { %429 = sst [smem:[#allocation5]] %s427_s3 }
 0x26a   :  { %441 = dma.smem_to_hbm %s548_s4, 16, %s724_s1, [#allocation4]  }
 0x26b   :  { %539 = dma.done.wait [#allocation4], 16  }
 0x26c   :  { %540 = vsyncadd [#allocation4], 4294967280 }
 0x26d   :  { %541 = dma.done.wait [#allocation7], 16  }
 0x26e   :  { %542 = vsyncadd [#allocation7], 4294967280 }
 0x26f   :  { %456 = sfence }
 0x270   :  { %457 = vsyncpa [#allocation3], 1 }
 0x271   :  { %458 = vsyncpa [#allocation4], 1 }
 0x272   :  { %459 = vsyncpa [#allocation7], 1 }

</bundles_post_ra>
